<compile_context>
chip_gen: v7x
topology: tpu7x:2x2x1
jax: 0.10.0
libtpu: 0.0.40
codegen_flags: <defaults>
</compile_context>

<pallas_src>
import math

import jax
import jax.numpy as jnp
from jax.experimental import pallas as pl
from jax.experimental.pallas import tpu as pltpu


_EPS = 1e-8


def _nalu_kernel(x_ref, gt_ref, w_ref, y_ref):
    """One batch tile of the NALU forward pass.

    x_ref : (tm, in_dim)      streamed input tile
    gt_ref: (1, in_dim)       gate weights transposed (VMEM resident)
    w_ref : (in_dim, n_pad)   precomputed NAC weight, zero-padded on lanes (resident)
    y_ref : (tm, n_pad)       lane-dense padded output tile
    """
    x = x_ref[...]                                           # (tm, in_dim) f32
    tm = x.shape[0]

    # Multiplicative path operates in log-space on |x| + eps (kept in f32).
    log_x = jnp.log(jnp.abs(x) + _EPS)

    # One MXU sequence for both paths: stack LHS rows, single (2*tm,K)@(K,N) dot.
    lhs = jnp.concatenate([x, log_x], axis=0)                # (2*tm, in_dim)
    p = jnp.dot(lhs, w_ref[...], preferred_element_type=jnp.float32)  # (2*tm, n_pad)

    a = p[:tm, :]                                            # additive path
    m = jnp.exp(p[tm:, :])                                   # multiplicative path

    # Gate as a VPU/XLU reduction instead of an N=1 MXU matmul.
    g = jax.nn.sigmoid(jnp.sum(x * gt_ref[...], axis=-1, keepdims=True))  # (tm, 1)

    y_ref[...] = (g * a + (1.0 - g) * m).astype(y_ref.dtype)


def _round_up(x, m):
    return ((x + m - 1) // m) * m


def _choose_tm(batch, max_tm=512, target_steps=4):
    """Largest multiple-of-8 batch tile <= max_tm that still yields a few grid steps."""
    tm = max(8, min(_round_up(batch, 8), max_tm))
    tm = (tm // 8) * 8
    while tm > 8 and batch // tm < target_steps:
        half = max(8, ((tm // 2) // 8) * 8)
        if half == tm:
            break
        tm = half
    return tm


def nalu_forward(x, g_param, w_hat, m_hat, *, tm=None):
    """NALU forward via a batch-tiled Pallas kernel."""
    batch, in_dim = x.shape
    out_dim = w_hat.shape[1]
    dtype = x.dtype

    # Hoisted, batch-independent NAC weight (done once, not per grid step).
    w = jnp.tanh(w_hat) * jax.nn.sigmoid(m_hat)              # (in_dim, out_dim)

    # Pad the output (lane) dim to a multiple of 128 for unmasked stores.
    n_pad = _round_up(out_dim, 128)
    if n_pad != out_dim:
        w = jnp.pad(w, ((0, 0), (0, n_pad - out_dim)))

    # Gate weights transposed so the kernel can do a row-wise reduction.
    g_t = g_param.reshape(in_dim, 1).T                        # (1, in_dim)

    # Batch tiling: multiple of 8 (f32 sublane), several grid steps for
    # pipelining and v7x megacore sharding.
    if tm is None:
        tm = _choose_tm(batch)
    assert tm % 8 == 0
    batch_pad = _round_up(batch, tm)
    if batch_pad != batch:
        x = jnp.pad(x, ((0, batch_pad - batch), (0, 0)))

    grid = (batch_pad // tm,)
    y_pad = pl.pallas_call(
        _nalu_kernel,
        out_shape=jax.ShapeDtypeStruct((batch_pad, n_pad), dtype),
        grid=grid,
        in_specs=[
            pl.BlockSpec((tm, in_dim), lambda i: (i, 0)),      # x tile (streamed)
            pl.BlockSpec((1, in_dim), lambda i: (0, 0)),       # G^T (resident)
            pl.BlockSpec((in_dim, n_pad), lambda i: (0, 0)),   # W (resident)
        ],
        out_specs=pl.BlockSpec((tm, n_pad), lambda i: (i, 0)),
        compiler_params=pltpu.CompilerParams(
            dimension_semantics=("parallel",),
            vmem_limit_bytes=32 * 1024 * 1024,
        ),
    )(x, g_t, w)

    # Strip batch and lane padding.
    return y_pad[:batch, :out_dim]


def xavier_uniform(key, shape, dtype=jnp.float32):
    """Deterministic xavier_uniform_ equivalent for a 2-D weight (fan_in, fan_out)."""
    fan_in, fan_out = shape
    bound = math.sqrt(6.0 / (fan_in + fan_out))
    return jax.random.uniform(key, shape, dtype=dtype, minval=-bound, maxval=bound)


def nalu_reference(x, g_param, w_hat, m_hat):
    """Pure-JAX reference for correctness checking."""
    w = jnp.tanh(w_hat) * jax.nn.sigmoid(m_hat)
    g = jax.nn.sigmoid(x @ g_param)
    a = x @ w
    m = jnp.exp(jnp.log(jnp.abs(x) + _EPS) @ w)
    return g * a + (1.0 - g) * m


if __name__ == "__main__":
    # Small, deterministic problem: batch=128 (tiled into 4 grid steps), in_dim=32, out_dim=16
    batch, in_dim, out_dim = 128, 32, 16

    key = jax.random.PRNGKey(0)
    k_x, k_g, k_w, k_m = jax.random.split(key, 4)

    x = jax.random.normal(k_x, (batch, in_dim), dtype=jnp.float32)
    g_param = xavier_uniform(k_g, (in_dim, 1))
    w_hat = xavier_uniform(k_w, (in_dim, out_dim))
    m_hat = xavier_uniform(k_m, (in_dim, out_dim))

    y = nalu_forward(x, g_param, w_hat, m_hat)
    y = jax.block_until_ready(y)

    y_ref = nalu_reference(x, g_param, w_hat, m_hat)
    assert y.shape == (batch, out_dim)
    assert jnp.allclose(y, y_ref, atol=1e-4, rtol=1e-4), "mismatch vs JAX reference"

    print("KERNEL_OK")
</pallas_src>

<mosaic_0001>
module attributes {stable_mosaic.version = 11 : i64} {
  func.func @_nalu_kernel(%arg0: i32, %arg1: memref<32x32xf32, #tpu.memory_space<vmem>>, %arg2: memref<1x32xf32, #tpu.memory_space<vmem>>, %arg3: memref<32x128xf32, #tpu.memory_space<vmem>>, %arg4: memref<32x128xf32, #tpu.memory_space<vmem>>) attributes {dimension_semantics = [#tpu.dimension_semantics<parallel>], iteration_bounds = array<i64: 4>, scalar_prefetch = 0 : i64, scratch_operands = 0 : i64, tpu.core_type = #tpu.core_type<tc>, window_params = [{transform_indices = @transform_0, window_bounds = array<i64: 32, 32>}, {pipeline_mode = #tpu.pipeline_mode<synchronous>, transform_indices = @transform_1, window_bounds = array<i64: 1, 32>}, {pipeline_mode = #tpu.pipeline_mode<synchronous>, transform_indices = @transform_2, window_bounds = array<i64: 32, 128>}, {transform_indices = @transform_3, window_bounds = array<i64: 32, 128>}]} {
    %c0 = arith.constant 0 : index
    %c0_0 = arith.constant 0 : index
    %0 = vector.load %arg1[%c0, %c0_0] : memref<32x32xf32, #tpu.memory_space<vmem>>, vector<32x32xf32>
    %1 = math.absf %0 : vector<32x32xf32>
    %cst = arith.constant 9.99999993E-9 : f32
    %2 = vector.broadcast %cst : f32 to vector<32x32xf32>
    %3 = arith.addf %1, %2 : vector<32x32xf32>
    %4 = math.log %3 : vector<32x32xf32>
    %5 = tpu.concatenate %0, %4 in 0 : vector<32x32xf32>, vector<32x32xf32> -> vector<64x32xf32>
    %c0_1 = arith.constant 0 : index
    %c0_2 = arith.constant 0 : index
    %6 = vector.load %arg3[%c0_1, %c0_2] : memref<32x128xf32, #tpu.memory_space<vmem>>, vector<32x128xf32>
    %cst_3 = arith.constant dense<0.000000e+00> : vector<64x128xf32>
    %7 = tpu.matmul %5, %6, %cst_3 {dimension_numbers = #tpu.dot_dimension_numbers<[1], [0], [0], [1], [0, 0, 1, 1], [], []>} : vector<64x32xf32>, vector<32x128xf32>, vector<64x128xf32> -> vector<64x128xf32>
    %8 = vector.extract_strided_slice %7 {offsets = [0, 0], sizes = [32, 128], strides = [1, 1]} : vector<64x128xf32> to vector<32x128xf32>
    %9 = vector.extract_strided_slice %7 {offsets = [32, 0], sizes = [32, 128], strides = [1, 1]} : vector<64x128xf32> to vector<32x128xf32>
    %10 = math.exp %9 : vector<32x128xf32>
    %c0_4 = arith.constant 0 : index
    %c0_5 = arith.constant 0 : index
    %11 = vector.load %arg2[%c0_4, %c0_5] : memref<1x32xf32, #tpu.memory_space<vmem>>, vector<1x32xf32>
    %12 = vector.broadcast %11 : vector<1x32xf32> to vector<32x32xf32>
    %13 = arith.mulf %0, %12 : vector<32x32xf32>
    %cst_6 = arith.constant dense<0.000000e+00> : vector<32xf32>
    %14 = vector.multi_reduction <add>, %13, %cst_6 [1] : vector<32x32xf32> to vector<32xf32>
    %15 = vector.shape_cast %14 : vector<32xf32> to vector<32x1xf32>
    %16 = arith.negf %15 : vector<32x1xf32>
    %17 = math.exp %16 : vector<32x1xf32>
    %cst_7 = arith.constant 1.000000e+00 : f32
    %18 = vector.broadcast %cst_7 : f32 to vector<32x1xf32>
    %19 = arith.addf %18, %17 : vector<32x1xf32>
    %20 = arith.divf %18, %19 : vector<32x1xf32>
    %21 = vector.broadcast %20 : vector<32x1xf32> to vector<32x128xf32>
    %22 = arith.mulf %21, %8 : vector<32x128xf32>
    %cst_8 = arith.constant 1.000000e+00 : f32
    %23 = vector.broadcast %cst_8 : f32 to vector<32x1xf32>
    %24 = arith.subf %23, %20 : vector<32x1xf32>
    %25 = vector.broadcast %24 : vector<32x1xf32> to vector<32x128xf32>
    %26 = arith.mulf %25, %10 : vector<32x128xf32>
    %27 = arith.addf %22, %26 : vector<32x128xf32>
    %c0_9 = arith.constant 0 : index
    %c0_10 = arith.constant 0 : index
    %28 = vector.load %arg4[%c0_9, %c0_10] : memref<32x128xf32, #tpu.memory_space<vmem>>, vector<32x128xf32>
    tpu.vector_store %arg4[%c0_9, %c0_10], %27 {strides = array<i32>} : memref<32x128xf32, #tpu.memory_space<vmem>>, vector<32x128xf32>,
    return
  }
  func.func @transform_0(%arg0: i32) -> (i32, i32) {
    %c0_i32 = arith.constant 0 : i32
    %c0_i32_0 = arith.constant 0 : i32
    return %arg0, %c0_i32 : i32, i32
  }
  func.func @transform_1(%arg0: i32) -> (i32, i32) {
    %c0_i32 = arith.constant 0 : i32
    %c0_i32_0 = arith.constant 0 : i32
    %c0_i32_1 = arith.constant 0 : i32
    return %c0_i32, %c0_i32_0 : i32, i32
  }
  func.func @transform_2(%arg0: i32) -> (i32, i32) {
    %c0_i32 = arith.constant 0 : i32
    %c0_i32_0 = arith.constant 0 : i32
    %c0_i32_1 = arith.constant 0 : i32
    return %c0_i32, %c0_i32_0 : i32, i32
  }
  func.func @transform_3(%arg0: i32) -> (i32, i32) {
    %c0_i32 = arith.constant 0 : i32
    %c0_i32_0 = arith.constant 0 : i32
    return %arg0, %c0_i32 : i32, i32
  }
}

</mosaic_0001>

<bundles_post_ra>
// kernel: tpu_custom_call.1
= control target key start
LH: loop header
LB: loop body
LE: loop exit
PB: predicated region body
PF: predicated region fallthrough
CT: control target
= control target key end

     0   :  { %8 = vsyncpa [#allocation3], 0  ;;  %s840_s0 = inlined_call_operand.vmem [shape: f32[128,32], index: 0, kind: input, shape index: {}]   ;;  %s841_s1 = inlined_call_operand.vmem [shape: f32[1,32], index: 1, kind: input, shape index: {}]   ;;  %s842_s2 = inlined_call_operand.vmem [shape: f32[32,128], index: 2, kind: input, shape index: {}]   ;;  %s843_s3 = inlined_call_operand.hbm [shape: f32[128,128], index: 3, kind: output, shape index: {}]  }
   0x1   :  { %10 = vsyncpa [#allocation3 + $0x1], 0  ;;  %s707_s12 = smov 0   ;;  %s709_s13 = smov 0  }
   0x2   :  { %s711_s14 = smov 0   ;;  %s713_s15 = smov 0  }
   0x3 LB: > { %s728_s16 = sadd.s32 4294967295, %s682_s15   ;;  %s477_s17 = sadd.s32 4294967294, %s682_s15   ;;  %s682_s15 = sphi %s713_s15, %s849_s15   ;;  %s678_s14 = sphi %s711_s14, %s848_s14   ;;  %s674_s13 = sphi %s709_s13, %s847_s13   ;;  %s670_s12 = sphi %s707_s12, %s846_s12  }
   0x4   : > { %s732_s18 = sadd.s32 1, %s682_s15   ;;  %s91_s19 = sadd.s32 1, %s678_s14 }
   0x5   : > { %s88_s20 = ssub.s32 %s682_s15, %s732_s18  ;;  %p101_p0 = scmp.ne.s32.totalorder %s678_s14, %s674_s13 }
   0x6   : > { %p89_p1 = scmp.eq.s32.totalorder %s88_s20, 0  ;;  %p102_p2 = scmp.eq.s32.totalorder %s728_s16, 3 }
   0x7   : > { %p107_p3 = scmp.ne.s32.totalorder %s674_s13, %s670_s12  ;;  %p108_p4 = scmp.eq.s32.totalorder %s477_s17, 3 }
   0x8   : > { %s743_s21 = scalar_select %p89_p1, %s678_s14, %s91_s19  }
   0x9   : > { %p745_p5 = por %p102_p2, %p101_p0  ;;  %p749_p6 = por %p108_p4, %p107_p3 }
   0xa   : > { %p480_p7 = scmp.ge.s32.totalorder %s682_s15, 1  ;;  %p141_p8 = scmp.lt.s32.totalorder %s682_s15, 5 }
   0xc   : > { %p142_p9 = pnand %p480_p7, %p141_p8 }
   0xd   : > { %v192_v0 = vld [vmem:[%s842_s2] sm:$0xff] (!%p142_p9)  ;;  %v193_v1 = vld [vmem:[%s842_s2 + $0x8] sm:$0xff] (!%p142_p9)  ;;  %v194_v2 = vld [vmem:[%s842_s2 + $0x10] sm:$0xff] (!%p142_p9)  ;;  %s482_s30 = sshll.u32 (!%p142_p9), %s728_s16, 2  ;;  %vm196_vm0 = vcmask (!%p142_p9), 261120   ;;  %s162_s17 = sand.u32 (!%p142_p9), 1, %s674_s13  }
   0xe   : > { %145 = sbr.rel (%p142_p9) target bundleno = 292 (0x124), region = 32  ;;  %v535_v3 = vpack.c.bf16 (!%p142_p9), %v193_v1, %v192_v0  ;;  %v195_v4 = vld [vmem:[%s842_s2 + $0x18] sm:$0xff] (!%p142_p9)  ;;  %p166_p10 = scmp.lt.s32.totalorder (!%p142_p9), %s482_s30, 15  ;;  %v492_v6 = vld [vmem:[%s841_s1] ss:$0 sm:$0xff] (!%p142_p9) }
   0xf   : > { %v539_v5 = vpack.c.bf16 (!%p142_p9), %v195_v4, %v194_v2  ;;  %s481_s19 = sshll.u32 (!%p142_p9), %s162_s17, 5  ;;  %s502_s25 = sshll.u32 (!%p142_p9), %s728_s16, 9 }
  0x10   : > { %543 = vmatprep.subr.bf16.mxu1 (!%p142_p9), %v535_v3  ;;  %536 = vmatprep.subr.bf16.mxu0 (!%p142_p9), %v535_v3  ;;  %s164_s20 = scalar_lea.vmem (!%p142_p9), [#allocation2], %s481_s19  ;;  %s795_s28 = scalar_lea.hbm (!%p142_p9), %s843_s3, %s502_s25 }
  0x11   : > { %545 = vmatpush3.bf16.msra.mxu1 (!%p142_p9), %v535_v3  ;;  %538 = vmatpush3.bf16.msra.mxu0 (!%p142_p9), %v535_v3  ;;  %s415_s24 = sshll.u32 (!%p142_p9), %s164_s20, 4  ;;  %s799_s16 = scalar_lea.sflag (!%p142_p9), [#allocation3], %s162_s17  ;;  %s790_s24 = int_to_ptr.vmem [resolvable:$true] %s415_s24 }
  0x12   : > { %544 = vmatprep.subr.bf16.mxu1 (!%p142_p9), %v539_v5  ;;  %540 = vmatprep.subr.bf16.mxu0 (!%p142_p9), %v539_v5  ;;  %s620_s29 = scalar_lea.vmem (!%p142_p9), %s790_s24, 512 }
  0x13   : > { %p621_p11 = scmp.ne.s32.totalorder (!%p142_p9), %s790_s24, %s620_s29 }
  0x15   : > { %s851_s30 = smov (!%p166_p10, %s482_s30), 15  ;;  %546 = vmatpush3.bf16.msra.mxu1 %v539_v5  ;;  %542 = vmatpush3.bf16.msra.mxu0 %v539_v5  ;;  %p622_p12 = pnand %p621_p11, %p745_p5 }
  0x16   : > { %s483_s6 = sshll.u32 %s851_s30, 3  ;;  %s684_s30 = smov [#allocation2]  }
  0x17   : > { %s169_s11 = scalar_lea.vmem %s840_s0, %s483_s6  ;;  %p623_p13 = pneg %p622_p12 }
  0x18   : > { %v172_v7 = vld [vmem:[%s169_s11] sm:$0xff]  ;;  %v173_v8 = vld [vmem:[%s169_s11 + $0x8] sm:$0xff]  ;;  %v174_v9 = vld [vmem:[%s169_s11 + $0x10] sm:$0xff]  ;;  %s624_s4 = sshll.u32 %s684_s30, 4  ;;  %s625_s4 = int_to_ptr.vmem [resolvable:$false] %s624_s4 }
  0x19   : > { %v176_v10 = vand.u32 2147483647, %v172_v7  ;;  %v177_v11 = vand.u32 2147483647, %v173_v8  ;;  %v178_v12 = vand.u32 2147483647, %v174_v9  ;;  %v341_v13 = vmul.f32 %v492_v6, %v172_v7  ;;  %523 = vmatprep.mubr.msk.f32.mxu0 %vm196_vm0, %v172_v7  ;;  %p627_p0 = scmp.lt.s32.totalorder %s790_s24, %s625_s4 }
  0x1a   : > { %v175_v14 = vld [vmem:[%s169_s11 + $0x18] sm:$0xff]  ;;  %v343_v15 = vmul.f32 %v492_v6, %v174_v9  ;;  %v342_v16 = vmul.f32 %v492_v6, %v173_v8  ;;  %524 = vmatmul.mubr.msk.f32.vlgmr.msra.gmra.mrb[0].mxu0 %vm196_vm0, %v173_v8  ;;  %s626_s5 = scalar_lea.vmem %s625_s4, 1024 }
  0x1b   : > { %v180_v17 = vadd.f32 1e-08, %v176_v10  ;;  %v181_v18 = vadd.f32 1e-08, %v177_v11  ;;  %v182_v19 = vadd.f32 1e-08, %v178_v12  ;;  %v344_v20 = vmul.f32 %v492_v6, %v175_v14  ;;  %526 = vmatprep.mubr.msk.f32.mxu0 %vm196_vm0, %v174_v9  ;;  %p628_p1 = scmp.lt.s32.totalorder %s626_s5, %s620_s29 }
  0x1c   : > { %v179_v21 = vand.u32 2147483647, %v175_v14  ;;  %v345_v22 = vsel %vm196_vm0, %v341_v13, 0.0  ;;  %v351_v23 = vsel %vm196_vm0, %v343_v15, 0.0  ;;  %v348_v25 = vsel %vm196_vm0, %v342_v16, 0.0 }
  0x1d   : > { %588 = vlog2.f32 %v180_v17  ;;  %346 = vadd.xlane.f32.xlu0 %v345_v22  ;;  %352 = vadd.xlane.f32.xlu1 %v351_v23  ;;  %v354_v26 = vsel %vm196_vm0, %v344_v20, 0.0  ;;  %p629_p2 = por %p628_p1, %p627_p0 }
  0x1e   : > { %590 = vlog2.f32 %v181_v18  ;;  %v183_v24 = vadd.f32 1e-08, %v179_v21  ;;  %527 = vmatmul.mubr.msk.f32.gmra.mrb[2].mxu0 %vm196_vm0, %v175_v14 }
  0x1f   : > { %592 = vlog2.f32 %v182_v19  ;;  %p630_p3 = pnand %p629_p2, %p623_p13 }
  0x20   : > { %594 = vlog2.f32 %v183_v24 }
  0x21   : > { %349 = vadd.xlane.f32.xlu0 %v348_v25  ;;  %355 = vadd.xlane.f32.xlu1 %v354_v26 }
  0x27   : > { %v589_v27 = vpop.eup %588 }
  0x28   : > { %v591_v28 = vpop.eup %590  ;;  %v185_v29 = vmul.f32 0.6931472, %v589_v27 }
  0x29   : > { %v593_v30 = vpop.eup %592  ;;  %v187_v31 = vmul.f32 0.6931472, %v591_v28 }
  0x2a   : > { %v595_v32 = vpop.eup %594  ;;  %529 = vmatprep.mubr.msk.f32.mxu1 %vm196_vm0, %v185_v29  ;;  %v189_v33 = vmul.f32 0.6931472, %v593_v30 }
  0x2b   : > { %530 = vmatmul.mubr.msk.f32.vlgmr.msra.gmra.mrb[0].mxu1 %vm196_vm0, %v187_v31  ;;  %v191_v34 = vmul.f32 0.6931472, %v595_v32 }
  0x2c   : > { %532 = vmatprep.mubr.msk.f32.mxu1 %vm196_vm0, %v189_v33 }
  0x2f   : > { %533 = vmatmul.mubr.msk.f32.gmra.mrb[2].mxu1 %vm196_vm0, %v191_v34 }
  0xaa   : > { %v347_v35 = vpop.xlane.xlu0 %346  ;;  %v353_v36 = vpop.xlane.xlu1 %352 }
  0xab   : > { %v493_v39 = vmul.f32 -1.442695, %v347_v35  ;;  %v495_v42 = vmul.f32 -1.442695, %v353_v36 }
  0xae   : > { %v350_v37 = vpop.xlane.xlu0 %349  ;;  %v356_v40 = vpop.xlane.xlu1 %355 }
  0xaf   : > { %v494_v38 = vmul.f32 -1.442695, %v350_v37  ;;  %v496_v41 = vmul.f32 -1.442695, %v356_v40 }
  0xb1   : > { %596 = vpow2.f32 %v494_v38 }
  0xb2   : > { %598 = vpow2.f32 %v493_v39 }
  0xb3   : > { %600 = vpow2.f32 %v496_v41 }
  0xb4   : > { %602 = vpow2.f32 %v495_v42 }
  0xbb   : > { %v597_v46 = vpop.eup %596 }
  0xbc   : > { %v599_v48 = vpop.eup %598  ;;  %v370_v49 = vadd.f32 1.0, %v597_v46 }
  0xbd   : > { %v601_v50 = vpop.eup %600  ;;  %v369_v51 = vadd.f32 1.0, %v599_v48 }
  0xbe   : > { %v603_v52 = vpop.eup %602  ;;  %604 = vrcp.f32 %v370_v49  ;;  %v372_v53 = vadd.f32 1.0, %v601_v50 }
  0xbf   : > { %606 = vrcp.f32 %v369_v51  ;;  %v371_v54 = vadd.f32 1.0, %v603_v52 }
  0xc0   : > { %608 = vrcp.f32 %v372_v53 }
  0xc1   : > { %610 = vrcp.f32 %v371_v54 }
  0xc8   : > { %v605_v63 = vpop.eup %604 }
  0xc9   : > { %v607_v0 = vpop.eup %606  ;;  %v386_v1 = vsub.f32 1.0, %v605_v63 }
  0xca   : > { %v609_v2 = vpop.eup %608  ;;  %v385_v3 = vsub.f32 1.0, %v607_v0 }
  0xcb   : > { %v611_v4 = vpop.eup %610  ;;  %v388_v9 = vsub.f32 1.0, %v609_v2 }
  0xcc   : > { %v387_v16 = vsub.f32 1.0, %v611_v4 }
  0xed   : > { %v525_v43 = vpop.f32.mrb[0].mxu0 }
  0xee   : > { %v287_v44 = vpop.f32.mrb[1].mxu0  ;;  %v382_v5 = vmul.f32 %v605_v63, %v525_v43 }
  0xef   : > { %v381_v10 = vmul.f32 %v607_v0, %v287_v44 }
  0xf1   : > { %v528_v45 = vpop.f32.mrb[2].mxu0 }
  0xf2   : > { %v297_v47 = vpop.f32.mrb[3].mxu0  ;;  %v384_v13 = vmul.f32 %v609_v2, %v528_v45 }
  0xf3   : > { %v383_v19 = vmul.f32 %v611_v4, %v297_v47 }
  0xfe   : > { %v531_v55 = vpop.f32.mrb[0].mxu1 }
  0xff   : > { %v328_v56 = vmul.f32 1.442695, %v531_v55  ;;  %v307_v57 = vpop.f32.mrb[1].mxu1 }
 0x100   : > { %v326_v58 = vmul.f32 1.442695, %v307_v57 }
 0x101   : > { %612 = vpow2.f32 %v328_v56 }
 0x102   : > { %614 = vpow2.f32 %v326_v58  ;;  %v534_v59 = vpop.f32.mrb[2].mxu1 }
 0x103   : > { %v332_v60 = vmul.f32 1.442695, %v534_v59  ;;  %v317_v61 = vpop.f32.mrb[3].mxu1 }
 0x104   : > { %v330_v62 = vmul.f32 1.442695, %v317_v61 }
 0x105   : > { %616 = vpow2.f32 %v332_v60 }
 0x106   : > { %618 = vpow2.f32 %v330_v62 }
 0x10b   : > { %v613_v6 = vpop.eup %612 }
 0x10c   : > { %v615_v7 = vpop.eup %614  ;;  %v390_v8 = vmul.f32 %v613_v6, %v386_v1 }
 0x10d   : > { %v389_v11 = vmul.f32 %v615_v7, %v385_v3 }
 0x10e   : > { %v394_v12 = vadd.f32 %v390_v8, %v382_v5 }
 0x10f   : > { %v617_v14 = vpop.eup %616  ;;  %v393_v15 = vadd.f32 %v389_v11, %v381_v10 }
 0x110   : > { %v619_v17 = vpop.eup %618  ;;  %398 = vst [vmem:[%s164_s20 + $0x8] sm:$0xff] %v394_v12  ;;  %v392_v18 = vmul.f32 %v617_v14, %v388_v9 }
 0x111   : > { %397 = vst [vmem:[%s164_s20] sm:$0xff] %v393_v15  ;;  %v391_v20 = vmul.f32 %v619_v17, %v387_v16 }
 0x112   : > { %v396_v21 = vadd.f32 %v392_v18, %v384_v13 }
 0x113   : > { %v395_v22 = vadd.f32 %v391_v20, %v383_v19 }
 0x114   : > { %400 = vst [vmem:[%s164_s20 + $0x18] sm:$0xff] %v396_v21 }
 0x115   : > { %399 = vst [vmem:[%s164_s20 + $0x10] sm:$0xff] %v395_v22 }
 0x116   : > { %633 = shalt.err (!%p630_p3)
}
 0x117   : > { %s634_s6 = scalar_lea.hbm %s795_s28, 512  ;;  %s638_s9 = scalar_lea.hbm %s843_s3, 2048 }
 0x118   : > { %p635_p4 = scmp.ne.s32.totalorder %s795_s28, %s634_s6  ;;  %p639_p9 = scmp.lt.u32.totalorder %s795_s28, %s843_s3 }
 0x119   : > { %p640_p10 = scmp.lt.u32.totalorder %s638_s9, %s634_s6  ;;  %p642_p12 = scmp.lt.u32.totalorder %s634_s6, %s795_s28 }
 0x11a   : > { %p636_p7 = pnand %p635_p4, %p745_p5 }
 0x11b   : > { %p641_p11 = por %p640_p10, %p639_p9 }
 0x11c   : > { %p637_p8 = pneg %p636_p7 }
 0x11d   : > { %p643_p13 = por %p642_p12, %p641_p11 }
 0x11f   : > { %p644_p0 = pnand %p643_p13, %p637_p8 }
 0x121   : > { %647 = shalt.err (!%p644_p0)
}
 0x122   : > { %s685_s17 = smov 128   ;;  %s686_s19 = smov 8  }
 0x123   : > { %547 = dma.vmem_to_hbm [thread:$0]  (%p745_p5), %s790_s24, 512, %s795_s28, %s799_s16, %s685_s17, %s685_s17, %s686_s19  }
 0x124 PF: > { %p553_p1 = scmp.ge.s32.totalorder %s682_s15, 2  ;;  %s430_s20 = sand.u32 1, %s670_s12  }
 0x125   : > { %s431_s25 = scalar_lea.sflag [#allocation3], %s430_s20 }
 0x126   : > { %p550_p2 = pnand %p553_p1, %p749_p6 }
 0x128   : > { %665 = dma.done.wait (!%p550_p2), %s431_s25, 512  }
 0x129   : > { %667 = vsyncadd (!%p550_p2), %s431_s25, 4294966784  ;;  %p13_p3 = scmp.ge.s32.totalorder %s732_s18, 6   ;;  %s846_s12 = smov %s674_s13 }
 0x12a   : > { %s847_s13 = smov %s678_s14  ;;  %s848_s14 = smov %s743_s21 }
 0x12b   : > { %s849_s15 = smov %s732_s18  ;;  %15 = sbr.rel (!%p13_p3) target bundleno = 3 (0x3), region = 67 }
 0x132   :  { %436 = vsyncpa [#allocation3], 1 }
 0x133   :  { %438 = vsyncpa [#allocation3 + $0x1], 1 }

</bundles_post_ra>
